<compile_context>
chip_gen: v7x
topology: tpu7x:2x2x1
jax: 0.10.0
libtpu: 0.0.40
codegen_flags: <defaults>
</compile_context>

<pallas_src>
import functools

import jax
import jax.numpy as jnp
from jax.experimental import pallas as pl
from jax.experimental.pallas import tpu as pltpu


def _policy_net_kernel(xT_ref, w1_ref, b1_ref, w2_ref, b2_ref, oT_ref):
    # fc1: (H, obs) @ (obs, TB) -> (H, TB); batch on the lane axis.
    h = jnp.tanh(
        jnp.dot(w1_ref[...], xT_ref[...], preferred_element_type=jnp.float32)
        + b1_ref[...]
    )
    # fc2: (A, H) @ (H, TB) -> (A, TB); lane-dense logits.
    logits = (
        jnp.dot(w2_ref[...], h, preferred_element_type=jnp.float32) + b2_ref[...]
    )
    # Numerically-stable softmax over the action axis (axis 0, tiny extent).
    # Exact divide (not approx reciprocal) so each row sums to 1 to float eps.
    m = jnp.max(logits, axis=0, keepdims=True)
    e = jnp.exp(logits - m)
    denom = jnp.sum(e, axis=0, keepdims=True)
    oT_ref[...] = (e / denom).astype(oT_ref.dtype)


def _round_up(v, m):
    return ((v + m - 1) // m) * m


@functools.partial(jax.jit, static_argnames=("block_b",))
def policy_net_forward(x, w1, b1, w2, b2, *, block_b=8192):
    """Forward pass of Policy_net.

    x : (B, obs_dim) float32
    w1: (H, obs_dim)  -- PyTorch nn.Linear layout (out_features, in_features)
    b1: (H,)
    w2: (A, H)
    b2: (A,)
    returns softmax probabilities of shape (B, A).

    NOTE: for a single-env action-selection path (B < 128) a plain jnp
    forward is faster than any kernel launch; this function always uses the
    Pallas kernel so the kernel itself is exercised.
    """
    B, obs_dim = x.shape
    H = w1.shape[0]
    A = w2.shape[0]

    # --- batch tile selection -------------------------------------------
    # Cap TB so the per-step working set (~0.4 KiB/lane) stays well inside
    # v7x's 64 MiB VMEM even if callers pass a huge block_b.
    block_b = min(int(block_b), 32768)
    B128 = _round_up(B, 128)                 # lane-dense batch
    if B128 <= block_b:
        TB = B128
        n_blocks = 1
    else:
        n_blocks = pl.cdiv(B128, block_b)
        if n_blocks % 2:                     # even count -> both v7x cores busy
            n_blocks += 1
        TB = _round_up(pl.cdiv(B128, n_blocks), 128)
        n_blocks = pl.cdiv(B128, TB)
    B_pad = n_blocks * TB

    if B_pad != B:
        x = jnp.pad(x, ((0, B_pad - B), (0, 0)))

    # Layout plumbing: put the batch on the lane (last) axis.
    xT = x.T                                 # (obs_dim, B_pad)
    b1c = b1.reshape(H, 1)
    b2c = b2.reshape(A, 1)

    # Raise the scoped-VMEM limit only when the working set needs it.
    # Generous estimate: double-buffered x/out tiles + h/logits temps.
    vmem_est = 6 * 128 * TB
    cp_kwargs = dict(dimension_semantics=("parallel",))
    if vmem_est > (16 << 20):
        cp_kwargs["vmem_limit_bytes"] = int(min(vmem_est, 64 << 20))

    outT = pl.pallas_call(
        _policy_net_kernel,
        out_shape=jax.ShapeDtypeStruct((A, B_pad), jnp.float32),
        grid=(n_blocks,),
        in_specs=[
            pl.BlockSpec((obs_dim, TB), lambda i: (0, i)),  # x tile, batch-indexed
            pl.BlockSpec((H, obs_dim), lambda i: (0, 0)),   # weights stay resident
            pl.BlockSpec((H, 1), lambda i: (0, 0)),
            pl.BlockSpec((A, H), lambda i: (0, 0)),
            pl.BlockSpec((A, 1), lambda i: (0, 0)),
        ],
        out_specs=pl.BlockSpec((A, TB), lambda i: (0, i)),  # lane-dense output
        compiler_params=pltpu.CompilerParams(**cp_kwargs),
    )(xT, w1, b1c, w2, b2c)

    return outT[:, :B].T                                    # back to (B, A)


if __name__ == "__main__":
    observation_dim = 4   # CartPole observation
    action_dim = 2        # CartPole actions
    hidden = 48

    key = jax.random.PRNGKey(0)
    kx, k1, k2, k3, k4, kx2 = jax.random.split(key, 6)

    # nn.Linear-style init (weight stored as (out_features, in_features)).
    bound1 = 1.0 / jnp.sqrt(observation_dim)
    bound2 = 1.0 / jnp.sqrt(hidden)
    w1 = jax.random.uniform(k1, (hidden, observation_dim),
                            minval=-bound1, maxval=bound1, dtype=jnp.float32)
    b1 = jax.random.uniform(k2, (hidden,),
                            minval=-bound1, maxval=bound1, dtype=jnp.float32)
    w2 = jax.random.uniform(k3, (action_dim, hidden),
                            minval=-bound2, maxval=bound2, dtype=jnp.float32)
    b2 = jax.random.uniform(k4, (action_dim,),
                            minval=-bound2, maxval=bound2, dtype=jnp.float32)

    def reference(xv):
        h = jnp.tanh(xv @ w1.T + b1)
        return jax.nn.softmax(h @ w2.T + b2, axis=-1)

    # Small CartPole-style batch (pads up to one 128-lane tile, grid=1).
    batch = 8
    x = jax.random.normal(kx, (batch, observation_dim), dtype=jnp.float32)
    out = jax.block_until_ready(policy_net_forward(x, w1, b1, w2, b2))
    assert out.shape == (batch, action_dim)
    assert jnp.allclose(out, reference(x), atol=2e-3), "small-batch mismatch"
    assert jnp.allclose(jnp.sum(out, axis=-1), 1.0, atol=2e-3)

    # Larger batch: default block_b -> single grid step (overhead-free path).
    batch2 = 2560
    x2 = jax.random.normal(kx2, (batch2, observation_dim), dtype=jnp.float32)
    out2 = jax.block_until_ready(policy_net_forward(x2, w1, b1, w2, b2))
    assert out2.shape == (batch2, action_dim)
    assert jnp.allclose(out2, reference(x2), atol=2e-3), "large-batch mismatch"
    assert jnp.allclose(jnp.sum(out2, axis=-1), 1.0, atol=2e-3)

    # Same batch with a small block_b to exercise the multi-block (even
    # block-count) pipelined grid path.
    out3 = jax.block_until_ready(
        policy_net_forward(x2, w1, b1, w2, b2, block_b=1024))
    assert out3.shape == (batch2, action_dim)
    assert jnp.allclose(out3, reference(x2), atol=2e-3), "multi-block mismatch"
    assert jnp.allclose(jnp.sum(out3, axis=-1), 1.0, atol=2e-3)

    print("KERNEL_OK")
</pallas_src>

<mosaic_0001>
module attributes {stable_mosaic.version = 11 : i64} {
  func.func @_policy_net_kernel(%arg0: i32, %arg1: memref<4x128xf32, #tpu.memory_space<vmem>>, %arg2: memref<48x4xf32, #tpu.memory_space<vmem>>, %arg3: memref<48x1xf32, #tpu.memory_space<vmem>>, %arg4: memref<2x48xf32, #tpu.memory_space<vmem>>, %arg5: memref<2x1xf32, #tpu.memory_space<vmem>>, %arg6: memref<2x128xf32, #tpu.memory_space<vmem>>) attributes {dimension_semantics = [#tpu.dimension_semantics<parallel>], iteration_bounds = array<i64: 1>, scalar_prefetch = 0 : i64, scratch_operands = 0 : i64, tpu.core_type = #tpu.core_type<tc>, window_params = [{transform_indices = @transform_0, window_bounds = array<i64: 4, 128>}, {pipeline_mode = #tpu.pipeline_mode<synchronous>, transform_indices = @transform_1, window_bounds = array<i64: 48, 4>}, {pipeline_mode = #tpu.pipeline_mode<synchronous>, transform_indices = @transform_2, window_bounds = array<i64: 48, 1>}, {pipeline_mode = #tpu.pipeline_mode<synchronous>, transform_indices = @transform_3, window_bounds = array<i64: 2, 48>}, {pipeline_mode = #tpu.pipeline_mode<synchronous>, transform_indices = @transform_4, window_bounds = array<i64: 2, 1>}, {transform_indices = @transform_5, window_bounds = array<i64: 2, 128>}]} {
    %c0 = arith.constant 0 : index
    %c0_0 = arith.constant 0 : index
    %0 = vector.load %arg2[%c0, %c0_0] : memref<48x4xf32, #tpu.memory_space<vmem>>, vector<48x4xf32>
    %c0_1 = arith.constant 0 : index
    %c0_2 = arith.constant 0 : index
    %1 = vector.load %arg1[%c0_1, %c0_2] : memref<4x128xf32, #tpu.memory_space<vmem>>, vector<4x128xf32>
    %cst = arith.constant dense<0.000000e+00> : vector<48x128xf32>
    %2 = tpu.matmul %0, %1, %cst {dimension_numbers = #tpu.dot_dimension_numbers<[1], [0], [0], [1], [0, 0, 1, 1], [], []>} : vector<48x4xf32>, vector<4x128xf32>, vector<48x128xf32> -> vector<48x128xf32>
    %c0_3 = arith.constant 0 : index
    %c0_4 = arith.constant 0 : index
    %3 = vector.load %arg3[%c0_3, %c0_4] : memref<48x1xf32, #tpu.memory_space<vmem>>, vector<48x1xf32>
    %4 = vector.broadcast %3 : vector<48x1xf32> to vector<48x128xf32>
    %5 = arith.addf %2, %4 : vector<48x128xf32>
    %6 = math.tanh %5 : vector<48x128xf32>
    %c0_5 = arith.constant 0 : index
    %c0_6 = arith.constant 0 : index
    %7 = vector.load %arg4[%c0_5, %c0_6] : memref<2x48xf32, #tpu.memory_space<vmem>>, vector<2x48xf32>
    %cst_7 = arith.constant dense<0.000000e+00> : vector<2x128xf32>
    %8 = tpu.matmul %7, %6, %cst_7 {dimension_numbers = #tpu.dot_dimension_numbers<[1], [0], [0], [1], [0, 0, 1, 1], [], []>} : vector<2x48xf32>, vector<48x128xf32>, vector<2x128xf32> -> vector<2x128xf32>
    %c0_8 = arith.constant 0 : index
    %c0_9 = arith.constant 0 : index
    %9 = vector.load %arg5[%c0_8, %c0_9] : memref<2x1xf32, #tpu.memory_space<vmem>>, vector<2x1xf32>
    %10 = vector.broadcast %9 : vector<2x1xf32> to vector<2x128xf32>
    %11 = arith.addf %8, %10 : vector<2x128xf32>
    %cst_10 = arith.constant dense<0xFF800000> : vector<128xf32>
    %12 = vector.multi_reduction <maximumf>, %11, %cst_10 [0] : vector<2x128xf32> to vector<128xf32>
    %13 = vector.shape_cast %12 : vector<128xf32> to vector<1x128xf32>
    %14 = vector.broadcast %13 : vector<1x128xf32> to vector<2x128xf32>
    %15 = arith.subf %11, %14 : vector<2x128xf32>
    %16 = math.exp %15 : vector<2x128xf32>
    %cst_11 = arith.constant dense<0.000000e+00> : vector<128xf32>
    %17 = vector.multi_reduction <add>, %16, %cst_11 [0] : vector<2x128xf32> to vector<128xf32>
    %18 = vector.shape_cast %17 : vector<128xf32> to vector<1x128xf32>
    %19 = vector.broadcast %18 : vector<1x128xf32> to vector<2x128xf32>
    %20 = arith.divf %16, %19 : vector<2x128xf32>
    %c0_12 = arith.constant 0 : index
    %c0_13 = arith.constant 0 : index
    %21 = vector.load %arg6[%c0_12, %c0_13] : memref<2x128xf32, #tpu.memory_space<vmem>>, vector<2x128xf32>
    tpu.vector_store %arg6[%c0_12, %c0_13], %20 {strides = array<i32>} : memref<2x128xf32, #tpu.memory_space<vmem>>, vector<2x128xf32>,
    return
  }
  func.func @transform_0(%arg0: i32) -> (i32, i32) {
    %c0_i32 = arith.constant 0 : i32
    %c0_i32_0 = arith.constant 0 : i32
    return %c0_i32, %arg0 : i32, i32
  }
  func.func @transform_1(%arg0: i32) -> (i32, i32) {
    %c0_i32 = arith.constant 0 : i32
    %c0_i32_0 = arith.constant 0 : i32
    %c0_i32_1 = arith.constant 0 : i32
    return %c0_i32, %c0_i32_0 : i32, i32
  }
  func.func @transform_2(%arg0: i32) -> (i32, i32) {
    %c0_i32 = arith.constant 0 : i32
    %c0_i32_0 = arith.constant 0 : i32
    %c0_i32_1 = arith.constant 0 : i32
    return %c0_i32, %c0_i32_0 : i32, i32
  }
  func.func @transform_3(%arg0: i32) -> (i32, i32) {
    %c0_i32 = arith.constant 0 : i32
    %c0_i32_0 = arith.constant 0 : i32
    %c0_i32_1 = arith.constant 0 : i32
    return %c0_i32, %c0_i32_0 : i32, i32
  }
  func.func @transform_4(%arg0: i32) -> (i32, i32) {
    %c0_i32 = arith.constant 0 : i32
    %c0_i32_0 = arith.constant 0 : i32
    %c0_i32_1 = arith.constant 0 : i32
    return %c0_i32, %c0_i32_0 : i32, i32
  }
  func.func @transform_5(%arg0: i32) -> (i32, i32) {
    %c0_i32 = arith.constant 0 : i32
    %c0_i32_0 = arith.constant 0 : i32
    return %c0_i32, %arg0 : i32, i32
  }
}

</mosaic_0001>

<bundles_post_ra>
// kernel: policy_net_forward.1
= control target key start
LH: loop header
LB: loop body
LE: loop exit
PB: predicated region body
PF: predicated region fallthrough
CT: control target
= control target key end

     0   :  { %vm82_vm0 = vcmask 1043456   ;;  %vm63_vm1 = vcmask 31744   ;;  %v372_v3 = vmov 0   ;;  %v373_v15 = vmov 0.0|0.0   ;;  %s460_s0 = inlined_call_operand.vmem [shape: f32[4,128], index: 0, kind: input, shape index: {}]   ;;  %s461_s1 = inlined_call_operand.vmem [shape: f32[48,4], index: 1, kind: input, shape index: {}]   ;;  %s462_s2 = inlined_call_operand.vmem [shape: f32[48,1], index: 2, kind: input, shape index: {}]   ;;  %s463_s4 = inlined_call_operand.vmem [shape: f32[2,1], index: 4, kind: input, shape index: {}]   ;;  %s464_s3 = inlined_call_operand.vmem [shape: f32[2,48], index: 3, kind: input, shape index: {}]   ;;  %s465_s5 = inlined_call_operand.vmem [shape: f32[2,128], index: 5, kind: output, shape index: {}]  }
   0x1   :  { %v26_v0 = vld [vmem:[%s460_s0] sm:$0xf]  ;;  %v21_v2 = vld [vmem:[%s461_s1 + $0x8] sm:$0xff]  ;;  %354 = vset.pattern.permute.xlu0 %v372_v3  ;;  %355 = vset.pattern.permute.xlu1 %v372_v3  ;;  %v22_v4 = vld [vmem:[%s461_s1 + $0x10] sm:$0xff]  ;;  %vm374_vm2 = vmmov 0   ;;  %v375_v16 = vmov 0.0  }
   0x2   :  { %v20_v1 = vld [vmem:[%s461_s1] sm:$0xff]  ;;  %315 = vmatprep.subr.msk.mxu0 %vm82_vm0, %v26_v0  ;;  %v29_v6 = vld [vmem:[%s462_s2 + $0x10] sm:$0xff]  ;;  %v23_v7 = vld [vmem:[%s461_s1 + $0x18] sm:$0xff]  ;;  %341 = vmatprep.subr.bf16.mxu1 %v373_v15  ;;  %vm194_vm3 = vcmask 392192   ;;  %vm268_vm4 = vcmask 1041408  }
   0x3   :  { %317 = vmatprep.mubr.msk.f32.mxu0 %vm63_vm1, %v20_v1  ;;  %316 = vmatpush3.msk.msra.mxu0 %vm82_vm0, %v26_v0  ;;  %v27_v5 = vld [vmem:[%s462_s2] sm:$0xff]  ;;  %v28_v8 = vld [vmem:[%s462_s2 + $0x8] sm:$0xff]  ;;  %v30_v10 = vld [vmem:[%s462_s2 + $0x18] sm:$0xff] }
   0x4   :  { %318 = vmatmul.mubr.msk.f32.vlgmr.msra.gmra.mrb[0].mxu0 %vm63_vm1, %v21_v2  ;;  %35 = vperm.xlu0 %354, %v27_v5   ;;  %v24_v9 = vld [vmem:[%s461_s1 + $0x20] sm:$0xff]  ;;  %v25_v11 = vld [vmem:[%s461_s1 + $0x28] sm:$0xff] }
   0x5   :  { %320 = vmatprep.mubr.msk.f32.mxu0 %vm63_vm1, %v22_v4  ;;  %45 = vperm.xlu1 %355, %v29_v6   ;;  %v31_v12 = vld [vmem:[%s462_s2 + $0x20] sm:$0xff]  ;;  %v32_v13 = vld [vmem:[%s462_s2 + $0x28] sm:$0xff] }
   0x6   :  { %v188_v14 = vld [vmem:[%s463_s4] sm:$0x3]  ;;  %338 = vmatprep.mubr.msk.f32.mxu1 %vm374_vm2, %v375_v16 }
   0x7   :  { %v187_v44 = vld [vmem:[%s464_s3] sm:$0x3] }
   0x8   :  { %321 = vmatmul.mubr.msk.f32.gmra.mrb[2].mxu0 %vm63_vm1, %v23_v7  ;;  %40 = vperm.xlu0 %354, %v28_v8  }
   0x9   :  { %323 = vmatprep.mubr.msk.f32.mxu0 %vm63_vm1, %v24_v9  ;;  %50 = vperm.xlu1 %355, %v30_v10  }
   0xc   :  { %324 = vmatmul.mubr.msk.f32.gmra.mrb[4].mxu0 %vm63_vm1, %v25_v11  ;;  %55 = vperm.xlu0 %354, %v31_v12  }
   0xd   :  { %60 = vperm.xlu1 %355, %v32_v13  }
  0x10   :  { %191 = vperm.xlu0 %354, %v188_v14  }
  0x83   :  { %v36_v17 = vpop.permute.xlu0 %35 }
  0x84   :  { %v46_v18 = vpop.permute.xlu1 %45 }
  0x87   :  { %v41_v19 = vpop.permute.xlu0 %40 }
  0x88   :  { %v51_v23 = vpop.permute.xlu1 %50 }
  0x8b   :  { %v56_v31 = vpop.permute.xlu0 %55 }
  0x8c   :  { %v61_v29 = vpop.permute.xlu1 %60 }
  0x8f   :  { %v192_v45 = vpop.permute.xlu0 %191 }
  0xd7   :  { %v319_v20 = vpop.f32.mrb[0].mxu0 }
  0xd8   :  { %v158_v21 = vadd.f32 %v319_v20, %v41_v19  ;;  %v152_v22 = vpop.f32.mrb[1].mxu0 }
  0xd9   :  { %v153_v24 = vadd.f32 %v152_v22, %v36_v17 }
  0xda   :  { %356 = vtanh.f32 %v158_v21 }
  0xdb   :  { %358 = vtanh.f32 %v153_v24  ;;  %v322_v25 = vpop.f32.mrb[2].mxu0 }
  0xdc   :  { %v168_v26 = vadd.f32 %v322_v25, %v51_v23  ;;  %v162_v27 = vpop.f32.mrb[3].mxu0 }
  0xdd   :  { %v163_v28 = vadd.f32 %v162_v27, %v46_v18 }
  0xde   :  { %360 = vtanh.f32 %v168_v26 }
  0xdf   :  { %362 = vtanh.f32 %v163_v28  ;;  %v325_v30 = vpop.f32.mrb[4].mxu0 }
  0xe0   :  { %v178_v32 = vadd.f32 %v325_v30, %v61_v29  ;;  %v172_v33 = vpop.f32.mrb[5].mxu0 }
  0xe1   :  { %v173_v34 = vadd.f32 %v172_v33, %v56_v31 }
  0xe2   :  { %364 = vtanh.f32 %v178_v32 }
  0xe3   :  { %366 = vtanh.f32 %v173_v34 }
  0xe4   :  { %v357_v35 = vpop.eup %356 }
  0xe5   :  { %v359_v36 = vpop.eup %358 }
  0xe6   :  { %v342_v37 = vpack.c.bf16 %v357_v35, %v359_v36 }
  0xe8   :  { %v361_v38 = vpop.eup %360  ;;  %343 = vmatpush3.bf16.msra.mxu1 %v342_v37 }
  0xe9   :  { %v363_v39 = vpop.eup %362  ;;  %344 = vmatprep.subr.bf16.mxu1 %v373_v15 }
  0xea   :  { %v345_v40 = vpack.c.bf16 %v361_v38, %v363_v39 }
  0xec   :  { %v365_v41 = vpop.eup %364  ;;  %346 = vmatpush3.bf16.msra.mxu1 %v345_v40 }
  0xed   :  { %v367_v42 = vpop.eup %366  ;;  %347 = vmatprep.subr.bf16.mxu1 %v373_v15 }
  0xee   :  { %v348_v43 = vpack.c.bf16 %v365_v41, %v367_v42 }
  0xf0   :  { %349 = vmatpush3.bf16.msra.mxu1 %v348_v43 }
  0xf3   :  { %339 = vmatmul.mubr.msk.f32.vlgmr.msra.gmra.mrb[0].mxu1 %vm194_vm3, %v187_v44 }
 0x1c6   :  { %v264_v46 = vpop.f32.mrb[0].mxu1 }
 0x1c7   :  { %v265_v47 = vadd.f32 %v264_v46, %v192_v45  ;;  %v340_v48 = vpop.f32.mrb[1].mxu1 }
 0x1c9   :  { %v269_v49 = vsel %vm268_vm4, %v265_v47, -inf }
 0x1ca   :  { %v270_v50 = vrot.slane %v269_v49, 4 }
 0x1cc   :  { %v271_v51 = vmax.f32 %v269_v49, %v270_v50 }
 0x1ce   :  { %v272_v52 = vrot.slane %v271_v51, 2 }
 0x1d0   :  { %v273_v53 = vmax.f32 %v271_v51, %v272_v52 }
 0x1d2   :  { %v274_v54 = vrot.slane %v273_v53, 1 }
 0x1d4   :  { %v275_v55 = vmax.f32 %v273_v53, %v274_v54 }
 0x1d6   :  { %v276_v56 = vsub.f32 %v265_v47, %v275_v55 }
 0x1d8   :  { %v277_v57 = vmul.f32 1.442695, %v276_v56 }
 0x1da   :  { %368 = vpow2.f32 %v277_v57 }
 0x1e4   :  { %v369_v58 = vpop.eup %368 }
 0x1e5   :  { %v279_v59 = vsel %vm268_vm4, %v369_v58, 0.0 }
 0x1e6   :  { %v280_v60 = vrot.slane %v279_v59, 4 }
 0x1e8   :  { %v281_v61 = vadd.f32 %v280_v60, %v279_v59 }
 0x1ea   :  { %v282_v62 = vrot.slane %v281_v61, 2 }
 0x1ec   :  { %v283_v63 = vadd.f32 %v282_v62, %v281_v61 }
 0x1ee   :  { %v284_v0 = vrot.slane %v283_v63, 1 }
 0x1f0   :  { %v285_v1 = vadd.f32 %v284_v0, %v283_v63 }
 0x1f2   :  { %370 = vrcp.f32 %v285_v1 }
 0x1fc   :  { %v371_v2 = vpop.eup %370 }
 0x1fd   :  { %v287_v3 = vmul.f32 %v371_v2, %v369_v58 }
 0x1ff   :  { %288 = vst [vmem:[%s465_s5] sm:$0x3] %v287_v3 }

</bundles_post_ra>
